<compile_context>
chip_gen: v5e
topology: v5e:2x2
jax: 0.10.0
libtpu: 0.0.40
codegen_flags: <defaults>
</compile_context>

<pallas_src>
import jax
import jax.numpy as jnp
import numpy as np
from jax.experimental import pallas as pl
from jax.experimental.pallas import tpu as pltpu

IMG_W = 0.07361963
_LABEL_W_LIST = (
    0.0736196319, 0.2346625767, 0.0782208589, 0.06257668712, 0.1042944785,
    0.06257668712, 0.1042944785, 0.1877300613, 0.09202453988,
)
_NUM_LABELS = len(_LABEL_W_LIST)
_SUM_LABEL_W = float(np.asarray(_LABEL_W_LIST, dtype=np.float32).sum())


def _bce_with_logits(logits, targets):
    # Numerically-stable BCEWithLogits (same formula PyTorch uses):
    # max(x, 0) - x*y + log(1 + exp(-|x|))
    return (jnp.maximum(logits, 0.0) - logits * targets
            + jnp.log1p(jnp.exp(-jnp.abs(logits))))


def _cdiv(a, b):
    return -(-a // b)


def _round_up(x, m):
    return _cdiv(x, m) * m


def _make_kernel(b_true, n_true, tb, need_row_mask):
    """Build the per-tile kernel with all shape constants baked in."""
    inv_n = 1.0 / float(n_true)

    def kernel(w_ref, y_img_ref, y_exam_ref, p_img_ref, p_exam_ref, out_ref):
        # Cast to f32 inside the kernel (inputs may be bf16 in HBM).
        y_img = y_img_ref[...].astype(jnp.float32)    # (tb, N)
        p_img = p_img_ref[...].astype(jnp.float32)    # (tb, N)
        y_exam = y_exam_ref[...].astype(jnp.float32)  # (tb, 9)
        p_exam = p_exam_ref[...].astype(jnp.float32)  # (tb, 9)
        w = w_ref[...]                                 # (1, 9) f32 input

        # ---- exam-level weighted BCE, reduced per row first ----
        exam_row = jnp.sum(_bce_with_logits(p_exam, y_exam) * w,
                           axis=1, keepdims=True)      # (tb, 1)

        # ---- image-level BCE: per-exam mean weighted by qi = sum(y_img) ----
        img_sum = jnp.sum(_bce_with_logits(p_img, y_img),
                          axis=1, keepdims=True)       # (tb, 1)
        qi = jnp.sum(y_img, axis=1, keepdims=True)     # (tb, 1)

        if need_row_mask:
            # Partial last block: out-of-bounds rows hold undefined data
            # (possibly Inf/NaN) -> select-mask AFTER the row reductions.
            i = pl.program_id(0)
            row_ids = i * tb + jax.lax.broadcasted_iota(jnp.int32, (tb, 1), 0)
            row_mask = row_ids < b_true                # (tb, 1) bool
            exam_row = jnp.where(row_mask, exam_row, 0.0)
            img_sum = jnp.where(row_mask, img_sum, 0.0)
            qi = jnp.where(row_mask, qi, 0.0)
            n_valid = jnp.sum(row_mask.astype(jnp.float32))
            part_w = n_valid * _SUM_LABEL_W + IMG_W * jnp.sum(qi)
        else:
            part_w = float(tb) * _SUM_LABEL_W + IMG_W * jnp.sum(qi)

        part_loss = jnp.sum(exam_row) + IMG_W * inv_n * jnp.sum(qi * img_sum)

        # Lane-dense partial output: lane 0 -> loss, lane 1 -> weights.
        lane = jax.lax.broadcasted_iota(jnp.int32, (1, 8, 128), 2)
        out_ref[...] = jnp.where(lane == 0, part_loss,
                                 jnp.where(lane == 1, part_w, 0.0))

    return kernel


def _vmem_budget_bytes():
    """Per-TC VMEM capacity; conservative v7x-sized default on failure."""
    try:
        info = pltpu.get_tpu_info()
        cap = getattr(info, "vmem_capacity_bytes", None)
        if cap:
            return int(cap)
    except Exception:
        pass
    return 64 * 1024 * 1024


def rsna_wloss(y_true_img, y_true_exam, y_pred_img, y_pred_exam, sizes=None):
    """y_*_img: (B, N); y_*_exam: (B, 9). Any float dtype; math runs in f32.

    Keep the (B, N) image tensors in bf16 at the HBM boundary when possible:
    the kernel is HBM-bound on v5e/v6e and casts to f32 in VMEM.
    """
    # TODO(synk): ragged per-exam image counts (`sizes`) would need scalar
    # prefetch + per-row masked means; fixed N per exam assumed (matches the
    # stacked-tensor call pattern of the PyTorch module).
    del sizes
    B, N = y_true_img.shape
    _, L = y_true_exam.shape
    assert L == _NUM_LABELS

    # ---- tile sizing (per-generation VMEM budgets) ----
    vmem_cap = _vmem_budget_bytes()
    big_vmem = vmem_cap >= 96 * 1024 * 1024             # v5e / v6e (128 MiB)
    target_elems = (2 * 1024 * 1024) if big_vmem else (1024 * 1024)
    vmem_limit = (96 * 1024 * 1024) if big_vmem else (48 * 1024 * 1024)

    if B <= 8:
        tb = B                 # one block; row dim == full array dim is legal
    else:
        max_rows = max(8, (target_elems // max(N, 1)) // 8 * 8)
        # Cap tb so there are >= 2 tiles: v7x's two TensorCores both get work.
        half = _round_up(_cdiv(B, 2), 8)
        tb = max(8, min(max_rows, half, _round_up(B, 8)))
    num_tiles = _cdiv(B, tb)
    need_row_mask = (B % tb) != 0

    label_w = jnp.asarray(_LABEL_W_LIST, dtype=jnp.float32).reshape(1, L)

    kernel = _make_kernel(B, N, tb, need_row_mask)

    img_spec = pl.BlockSpec((tb, N), lambda i: (i, 0))   # true N: no pad copy
    exam_spec = pl.BlockSpec((tb, L), lambda i: (i, 0))
    w_spec = pl.BlockSpec((1, L), lambda i: (0, 0))

    partials = pl.pallas_call(
        kernel,
        grid=(num_tiles,),
        out_shape=jax.ShapeDtypeStruct((num_tiles, 8, 128), jnp.float32),
        in_specs=[w_spec, img_spec, exam_spec, img_spec, exam_spec],
        out_specs=pl.BlockSpec((1, 8, 128), lambda i: (i, 0, 0)),
        compiler_params=pltpu.CompilerParams(
            dimension_semantics=("parallel",),
            vmem_limit_bytes=vmem_limit),
    )(label_w, y_true_img, y_true_exam, y_pred_img, y_pred_exam)

    # Single reduce + divide epilogue.
    totals = jnp.sum(partials[:, 0, :2], axis=0)
    return totals[0] / totals[1]


def rsna_wloss_ref(y_true_img, y_true_exam, y_pred_img, y_pred_exam):
    """Pure-JAX reference mirroring the PyTorch loop semantics."""
    label_w = jnp.asarray(_LABEL_W_LIST, dtype=jnp.float32).reshape(1, -1)
    y_true_img = y_true_img.astype(jnp.float32)
    y_true_exam = y_true_exam.astype(jnp.float32)
    y_pred_img = y_pred_img.astype(jnp.float32)
    y_pred_exam = y_pred_exam.astype(jnp.float32)

    exam_bce = _bce_with_logits(y_pred_exam, y_true_exam)
    exam_loss = jnp.sum(exam_bce * label_w, axis=1)
    img_bce = _bce_with_logits(y_pred_img, y_true_img)
    img_mean = jnp.mean(img_bce, axis=1)
    qi = jnp.sum(y_true_img, axis=1)
    img_loss = IMG_W * qi * img_mean
    total_loss = jnp.sum(exam_loss + img_loss)
    B = y_true_img.shape[0]
    total_w = B * jnp.sum(label_w) + IMG_W * jnp.sum(qi)
    return total_loss / total_w


if __name__ == "__main__":
    key = jax.random.PRNGKey(0)

    def run_case(case_key, B, N, L=_NUM_LABELS):
        k1, k2, k3, k4 = jax.random.split(case_key, 4)
        y_true_img = (jax.random.uniform(k1, (B, N)) > 0.5).astype(jnp.float32)
        y_true_exam = (jax.random.uniform(k2, (B, L)) > 0.5).astype(jnp.float32)
        y_pred_img = jax.random.normal(k3, (B, N), dtype=jnp.float32)
        y_pred_exam = jax.random.normal(k4, (B, L), dtype=jnp.float32)
        sizes = jnp.full((B,), N, dtype=jnp.int32)
        loss = rsna_wloss(y_true_img, y_true_exam, y_pred_img, y_pred_exam, sizes)
        loss = jax.block_until_ready(loss)
        ref = rsna_wloss_ref(y_true_img, y_true_exam, y_pred_img, y_pred_exam)
        assert jnp.allclose(loss, ref, rtol=1e-5, atol=1e-5), (B, N, loss, ref)

    k_a, k_b = jax.random.split(key)
    run_case(k_a, B=2, N=16)    # single full block
    run_case(k_b, B=10, N=48)   # multi-tile grid + partial (masked) last block

    print("KERNEL_OK")
</pallas_src>

<mosaic_0001>
module attributes {stable_mosaic.version = 11 : i64} {
  func.func @kernel(%arg0: i32, %arg1: memref<1x9xf32, #tpu.memory_space<vmem>>, %arg2: memref<2x16xf32, #tpu.memory_space<vmem>>, %arg3: memref<2x9xf32, #tpu.memory_space<vmem>>, %arg4: memref<2x16xf32, #tpu.memory_space<vmem>>, %arg5: memref<2x9xf32, #tpu.memory_space<vmem>>, %arg6: memref<1x8x128xf32, #tpu.memory_space<vmem>>) attributes {dimension_semantics = [#tpu.dimension_semantics<parallel>], iteration_bounds = array<i64: 1>, scalar_prefetch = 0 : i64, scratch_operands = 0 : i64, tpu.core_type = #tpu.core_type<tc>, window_params = [{pipeline_mode = #tpu.pipeline_mode<synchronous>, transform_indices = @transform_0, window_bounds = array<i64: 1, 9>}, {transform_indices = @transform_1, window_bounds = array<i64: 2, 16>}, {transform_indices = @transform_2, window_bounds = array<i64: 2, 9>}, {transform_indices = @transform_3, window_bounds = array<i64: 2, 16>}, {transform_indices = @transform_4, window_bounds = array<i64: 2, 9>}, {transform_indices = @transform_5, window_bounds = array<i64: 1, 8, 128>}]} {
    %c0 = arith.constant 0 : index
    %c0_0 = arith.constant 0 : index
    %0 = vector.load %arg2[%c0, %c0_0] : memref<2x16xf32, #tpu.memory_space<vmem>>, vector<2x16xf32>
    %c0_1 = arith.constant 0 : index
    %c0_2 = arith.constant 0 : index
    %1 = vector.load %arg4[%c0_1, %c0_2] : memref<2x16xf32, #tpu.memory_space<vmem>>, vector<2x16xf32>
    %c0_3 = arith.constant 0 : index
    %c0_4 = arith.constant 0 : index
    %2 = vector.load %arg3[%c0_3, %c0_4] : memref<2x9xf32, #tpu.memory_space<vmem>>, vector<2x9xf32>
    %c0_5 = arith.constant 0 : index
    %c0_6 = arith.constant 0 : index
    %3 = vector.load %arg5[%c0_5, %c0_6] : memref<2x9xf32, #tpu.memory_space<vmem>>, vector<2x9xf32>
    %c0_7 = arith.constant 0 : index
    %c0_8 = arith.constant 0 : index
    %4 = vector.load %arg1[%c0_7, %c0_8] : memref<1x9xf32, #tpu.memory_space<vmem>>, vector<1x9xf32>
    %cst = arith.constant 0.000000e+00 : f32
    %5 = vector.broadcast %cst : f32 to vector<2x9xf32>
    %6 = arith.maximumf %3, %5 : vector<2x9xf32>
    %7 = arith.mulf %3, %2 : vector<2x9xf32>
    %8 = arith.subf %6, %7 : vector<2x9xf32>
    %9 = math.absf %3 : vector<2x9xf32>
    %cst_9 = arith.constant 0.000000e+00 : f32
    %10 = vector.broadcast %cst_9 : f32 to vector<2x9xf32>
    %11 = arith.subf %10, %9 : vector<2x9xf32>
    %12 = math.exp %11 : vector<2x9xf32>
    %13 = math.log1p %12 : vector<2x9xf32>
    %14 = arith.addf %8, %13 : vector<2x9xf32>
    %15 = vector.broadcast %4 : vector<1x9xf32> to vector<2x9xf32>
    %16 = arith.mulf %14, %15 : vector<2x9xf32>
    %cst_10 = arith.constant dense<0.000000e+00> : vector<2xf32>
    %17 = vector.multi_reduction <add>, %16, %cst_10 [1] : vector<2x9xf32> to vector<2xf32>
    %18 = vector.shape_cast %17 : vector<2xf32> to vector<2x1xf32>
    %cst_11 = arith.constant 0.000000e+00 : f32
    %19 = vector.broadcast %cst_11 : f32 to vector<2x16xf32>
    %20 = arith.maximumf %1, %19 : vector<2x16xf32>
    %21 = arith.mulf %1, %0 : vector<2x16xf32>
    %22 = arith.subf %20, %21 : vector<2x16xf32>
    %23 = math.absf %1 : vector<2x16xf32>
    %cst_12 = arith.constant 0.000000e+00 : f32
    %24 = vector.broadcast %cst_12 : f32 to vector<2x16xf32>
    %25 = arith.subf %24, %23 : vector<2x16xf32>
    %26 = math.exp %25 : vector<2x16xf32>
    %27 = math.log1p %26 : vector<2x16xf32>
    %28 = arith.addf %22, %27 : vector<2x16xf32>
    %cst_13 = arith.constant dense<0.000000e+00> : vector<2xf32>
    %29 = vector.multi_reduction <add>, %28, %cst_13 [1] : vector<2x16xf32> to vector<2xf32>
    %30 = vector.shape_cast %29 : vector<2xf32> to vector<2x1xf32>
    %cst_14 = arith.constant dense<0.000000e+00> : vector<2xf32>
    %31 = vector.multi_reduction <add>, %0, %cst_14 [1] : vector<2x16xf32> to vector<2xf32>
    %32 = vector.shape_cast %31 : vector<2xf32> to vector<2x1xf32>
    %33 = vector.shape_cast %32 : vector<2x1xf32> to vector<1x2x1xf32>
    %cst_15 = arith.constant dense<0.000000e+00> : vector<1xf32>
    %34 = vector.multi_reduction <add>, %33, %cst_15 [1, 2] : vector<1x2x1xf32> to vector<1xf32>
    %35 = vector.shape_cast %34 : vector<1xf32> to vector<1x1x1xf32>
    %36 = vector.extract %35[0, 0, 0] : f32 from vector<1x1x1xf32>
    %cst_16 = arith.constant 0.0736196265 : f32
    %37 = arith.mulf %cst_16, %36 : f32
    %cst_17 = arith.constant 2.000000e+00 : f32
    %38 = arith.addf %cst_17, %37 : f32
    %39 = vector.shape_cast %18 : vector<2x1xf32> to vector<1x2x1xf32>
    %cst_18 = arith.constant dense<0.000000e+00> : vector<1xf32>
    %40 = vector.multi_reduction <add>, %39, %cst_18 [1, 2] : vector<1x2x1xf32> to vector<1xf32>
    %41 = vector.shape_cast %40 : vector<1xf32> to vector<1x1x1xf32>
    %42 = vector.extract %41[0, 0, 0] : f32 from vector<1x1x1xf32>
    %43 = arith.mulf %32, %30 : vector<2x1xf32>
    %44 = vector.shape_cast %43 : vector<2x1xf32> to vector<1x2x1xf32>
    %cst_19 = arith.constant dense<0.000000e+00> : vector<1xf32>
    %45 = vector.multi_reduction <add>, %44, %cst_19 [1, 2] : vector<1x2x1xf32> to vector<1xf32>
    %46 = vector.shape_cast %45 : vector<1xf32> to vector<1x1x1xf32>
    %47 = vector.extract %46[0, 0, 0] : f32 from vector<1x1x1xf32>
    %cst_20 = arith.constant 0.00460122665 : f32
    %48 = arith.mulf %cst_20, %47 : f32
    %49 = arith.addf %42, %48 : f32
    %50 = tpu.iota {dimensions = array<i32: 2>} : vector<1x8x128xi32>
    %c0_i32 = arith.constant 0 : i32
    %51 = vector.broadcast %c0_i32 : i32 to vector<1x8x128xi32>
    %52 = arith.cmpi eq, %50, %51 : vector<1x8x128xi32>
    %c1_i32 = arith.constant 1 : i32
    %53 = vector.broadcast %c1_i32 : i32 to vector<1x8x128xi32>
    %54 = arith.cmpi eq, %50, %53 : vector<1x8x128xi32>
    %cst_21 = arith.constant 0.000000e+00 : f32
    %55 = vector.broadcast %38 : f32 to vector<1x8x128xf32>
    %56 = vector.broadcast %cst_21 : f32 to vector<1x8x128xf32>
    %57 = arith.select %54, %55, %56 : vector<1x8x128xi1>, vector<1x8x128xf32>
    %58 = vector.broadcast %49 : f32 to vector<1x8x128xf32>
    %59 = arith.select %52, %58, %57 : vector<1x8x128xi1>, vector<1x8x128xf32>
    %c0_22 = arith.constant 0 : index
    %c0_23 = arith.constant 0 : index
    %c0_24 = arith.constant 0 : index
    %60 = vector.load %arg6[%c0_22, %c0_23, %c0_24] : memref<1x8x128xf32, #tpu.memory_space<vmem>>, vector<1x8x128xf32>
    tpu.vector_store %arg6[%c0_22, %c0_23, %c0_24], %59 {strides = array<i32>} : memref<1x8x128xf32, #tpu.memory_space<vmem>>, vector<1x8x128xf32>,
    return
  }
  func.func @transform_0(%arg0: i32) -> (i32, i32) {
    %c0_i32 = arith.constant 0 : i32
    %c0_i32_0 = arith.constant 0 : i32
    %c0_i32_1 = arith.constant 0 : i32
    return %c0_i32, %c0_i32_0 : i32, i32
  }
  func.func @transform_1(%arg0: i32) -> (i32, i32) {
    %c0_i32 = arith.constant 0 : i32
    %c0_i32_0 = arith.constant 0 : i32
    return %arg0, %c0_i32 : i32, i32
  }
  func.func @transform_2(%arg0: i32) -> (i32, i32) {
    %c0_i32 = arith.constant 0 : i32
    %c0_i32_0 = arith.constant 0 : i32
    return %arg0, %c0_i32 : i32, i32
  }
  func.func @transform_3(%arg0: i32) -> (i32, i32) {
    %c0_i32 = arith.constant 0 : i32
    %c0_i32_0 = arith.constant 0 : i32
    return %arg0, %c0_i32 : i32, i32
  }
  func.func @transform_4(%arg0: i32) -> (i32, i32) {
    %c0_i32 = arith.constant 0 : i32
    %c0_i32_0 = arith.constant 0 : i32
    return %arg0, %c0_i32 : i32, i32
  }
  func.func @transform_5(%arg0: i32) -> (i32, i32, i32) {
    %c0_i32 = arith.constant 0 : i32
    %c0_i32_0 = arith.constant 0 : i32
    %c0_i32_1 = arith.constant 0 : i32
    return %arg0, %c0_i32, %c0_i32_0 : i32, i32, i32
  }
}

</mosaic_0001>

<bundles_post_ra>
// kernel: tpu_custom_call.1
= control target key start
LH: loop header
LB: loop body
LE: loop exit
PB: predicated region body
PF: predicated region fallthrough
CT: control target
= control target key end

     0   :  { %10 = vsyncpa [#allocation3], 0  ;;  %s395_s0 = inlined_call_operand.hbm [shape: f32[1,9], index: 0, kind: input, shape index: {}]   ;;  %s396_s1 = inlined_call_operand.hbm [shape: f32[2,16], index: 1, kind: input, shape index: {}]   ;;  %s397_s2 = inlined_call_operand.hbm [shape: f32[2,9], index: 2, kind: input, shape index: {}]   ;;  %s398_s3 = inlined_call_operand.vmem [shape: f32[2,16], index: 3, kind: input, shape index: {}]   ;;  %s399_s4 = inlined_call_operand.hbm [shape: f32[2,9], index: 4, kind: input, shape index: {}]   ;;  %s400_s5 = inlined_call_operand.hbm [shape: f32[1,8,128], index: 5, kind: output, shape index: {}]  }
   0x1   :  { %11 = vsyncpa [#allocation6], 0 }
   0x2   :  { %12 = vsyncpa [#allocation9], 0  ;;  %s30_s20 = sshll.u32 %s396_s1, 4  ;;  %s31_s20 = int_to_ptr.hbm [resolvable:$true] %s30_s20 }
   0x3   :  { %13 = vsyncpa [#allocation4], 0  ;;  %s342_s21 = smov [#allocation5]   ;;  %s19_s25 = sshll.u32 %s395_s0, 4  ;;  %s20_s25 = int_to_ptr.hbm [resolvable:$true] %s19_s25 }
   0x4   :  { %s32_s22 = sshll.u32 %s342_s21, 4  ;;  %s343_s26 = smov [#allocation2]   ;;  %s33_s22 = int_to_ptr.vmem [resolvable:$true] %s32_s22 }
   0x5   :  { %35 = dma.hbm_to_vmem [thread:$0]  %s31_s20, 32, %s33_s22, [#allocation6]  }
   0x6   :  { %s21_s27 = sshll.u32 %s343_s26, 4  ;;  %s41_s30 = sshll.u32 %s397_s2, 4  ;;  %s22_s27 = int_to_ptr.vmem [resolvable:$true] %s21_s27  ;;  %s42_s30 = int_to_ptr.hbm [resolvable:$true] %s41_s30 }
   0x7   :  { %24 = dma.hbm_to_vmem [thread:$0]  %s20_s25, 16, %s22_s27, [#allocation3]  }
   0x8   :  { %s54_s7 = sshll.u32 %s399_s4, 4  ;;  %s344_s8 = smov [#allocation7]   ;;  %s55_s7 = int_to_ptr.hbm [resolvable:$true] %s54_s7 }
   0x9   :  { %s43_s9 = sshll.u32 %s344_s8, 4  ;;  %s345_s0 = smov [#allocation8]   ;;  %s44_s9 = int_to_ptr.vmem [resolvable:$true] %s43_s9 }
   0xa   :  { %46 = dma.hbm_to_vmem [thread:$0]  %s42_s30, 32, %s44_s9, [#allocation6]  }
   0xb   :  { %s56_s10 = sshll.u32 %s345_s0, 4  ;;  %s57_s10 = int_to_ptr.vmem [resolvable:$true] %s56_s10 }
   0xc   :  { %59 = dma.hbm_to_vmem [thread:$0]  %s55_s7, 32, %s57_s10, [#allocation9]  }
   0xd   :  { %334 = dma.done.wait [#allocation3], 16  }
   0xe   :  { %335 = vsyncadd [#allocation3], 4294967280 }
   0xf   :  { %336 = dma.done.wait [#allocation6], 64  }
  0x10   :  { %337 = vsyncadd [#allocation6], 4294967232 }
  0x11   :  { %338 = dma.done.wait [#allocation9], 32  }
  0x12   :  { %339 = vsyncadd [#allocation9], 4294967264  ;;  %v77_v0 = vld [vmem:[%s398_s3] sm:$0x3]  ;;  %v79_v2 = vld [vmem:[#allocation8] sm:$0x3] }
  0x13   :  { %v109_v1 = vand.u32 2147483647, %v77_v0  ;;  %v84_v3 = vand.u32 2147483647, %v79_v2  ;;  %v76_v12 = vld [vmem:[#allocation5] sm:$0x3] }
  0x14   :  { %v78_v15 = vld [vmem:[#allocation7] sm:$0x3]  ;;  %v106_v17 = vmax.f32 %v77_v0, 0.0  ;;  %v107_v18 = vmul.f32 %v77_v0, %v76_v12  ;;  %v81_v21 = vmax.f32 %v79_v2, 0.0  ;;  %vm123_vm2 = vcmask 123904   ;;  %s346_s16 = smov [#allocation10]  }
  0x15   :  { %v110_v4 = vsub.f32 0.0, %v109_v1  ;;  %v85_v5 = vsub.f32 0.0, %v84_v3  ;;  %v82_v22 = vmul.f32 %v79_v2, %v78_v15  ;;  %v205_v33 = vld [vmem:[#allocation2] ss:$0 sm:$0xff]  ;;  %vm102_vm3 = vcmask 66560   ;;  %s180_s17 = sshll.u32 %s346_s16, 4  ;;  %s181_s17 = int_to_ptr.vmem [resolvable:$true] %s180_s17 }
  0x16   :  { %v108_v26 = vsub.f32 %v106_v17, %v107_v18  ;;  %v127_v40 = vsel %vm123_vm2, %v76_v12, 0.0  ;;  %vm130_vm4 = vcmask 1024   ;;  %s182_s20 = sshll.u32 %s400_s5, 4  ;;  %s183_s20 = int_to_ptr.hbm [resolvable:$true] %s182_s20 }
  0x17   :  { %v111_v6 = vmul.f32 1.442695, %v110_v4  ;;  %v86_v7 = vmul.f32 1.442695, %v85_v5  ;;  %v83_v30 = vsub.f32 %v81_v21, %v82_v22  ;;  %v166_v5 = vlaneseq }
  0x19   :  { %206 = vpow2.f32 %v111_v6  ;;  %v167_v6 = vand.u32 127, %v166_v5 }
  0x1a   :  { %208 = vpow2.f32 %v86_v7 }
  0x1b   :  { %vm169_vm5 = vcmp.eq.s32.totalorder %v167_v6, 1  ;;  %vm168_vm6 = vcmp.eq.s32.totalorder %v167_v6, 0 }
  0x1f   :  { %v207_v8 = vpop.eup %206 }
  0x20   :  { %v209_v9 = vpop.eup %208  ;;  %v113_v10 = vadd.f32 1.0, %v207_v8  ;;  %v116_v11 = vmul.f32 -0.5, %v207_v8  ;;  %v119_v19 = vand.u32 2147483647, %v207_v8 }
  0x21   :  { %v88_v13 = vadd.f32 1.0, %v209_v9  ;;  %v91_v14 = vmul.f32 -0.5, %v209_v9  ;;  %v94_v23 = vand.u32 2147483647, %v209_v9 }
  0x22   :  { %210 = vlog2.f32 %v113_v10  ;;  %v117_v16 = vadd.f32 1.0, %v116_v11  ;;  %vm120_vm0 = vcmp.lt.f32.partialorder %v119_v19, 0.0004427343 }
  0x23   :  { %212 = vlog2.f32 %v88_v13  ;;  %v92_v20 = vadd.f32 1.0, %v91_v14  ;;  %vm95_vm1 = vcmp.lt.f32.partialorder %v94_v23, 0.0004427343 }
  0x24   :  { %v118_v24 = vmul.f32 %v207_v8, %v117_v16 }
  0x25   :  { %v93_v27 = vmul.f32 %v209_v9, %v92_v20 }
  0x28   :  { %v211_v25 = vpop.eup %210 }
  0x29   :  { %v213_v28 = vpop.eup %212  ;;  %v115_v29 = vmul.f32 0.6931472, %v211_v25 }
  0x2a   :  { %v90_v31 = vmul.f32 0.6931472, %v213_v28 }
  0x2b   :  { %v121_v32 = vsel %vm120_vm0, %v118_v24, %v115_v29 }
  0x2c   :  { %v122_v34 = vadd.f32 %v121_v32, %v108_v26  ;;  %v96_v35 = vsel %vm95_vm1, %v93_v27, %v90_v31 }
  0x2d   :  { %v97_v36 = vadd.f32 %v96_v35, %v83_v30 }
  0x2e   :  { %v124_v37 = vsel %vm123_vm2, %v122_v34, 0.0 }
  0x2f   :  { %125 = vadd.xlane.f32.xlu0 %v124_v37  ;;  %v101_v38 = vmul.f32 %v205_v33, %v97_v36 }
  0x31   :  { %v103_v39 = vsel %vm102_vm3, %v101_v38, 0.0 }
  0x32   :  { %104 = vadd.xlane.f32.xlu1 %v103_v39 }
  0x37   :  { %128 = vadd.xlane.f32.xlu0 %v127_v40 }
  0xa2   :  { %v126_v41 = vpop.xlane.xlu0 %125 }
  0xa5   :  { %v105_v42 = vpop.xlane.xlu1 %104 }
  0xa6   :  { %v143_v43 = vsel %vm130_vm4, %v105_v42, 0.0 }
  0xa7   :  { %144 = vadd.xlane.f32.xlu2 %v143_v43 }
  0xaa   :  { %v129_v44 = vpop.xlane.xlu0 %128 }
  0xab   :  { %v153_v45 = vmul.f32 %v129_v44, %v126_v41  ;;  %v131_v46 = vsel %vm130_vm4, %v129_v44, 0.0 }
  0xac   :  { %132 = vadd.xlane.f32.xlu1 %v131_v46 }
  0xad   :  { %v154_v47 = vsel %vm130_vm4, %v153_v45, 0.0 }
  0xaf   :  { %155 = vadd.xlane.f32.xlu2 %v154_v47 }
 0x11a   :  { %v145_v48 = vpop.xlane.xlu2 %144 }
 0x11b   :  { %v146_v49 = vrot.slane %v145_v48, 4 }
 0x11d   :  { %v147_v50 = vadd.f32 %v146_v49, %v145_v48 }
 0x11f   :  { %v148_v51 = vrot.slane %v147_v50, 2  ;;  %v133_v52 = vpop.xlane.xlu1 %132 }
 0x120   :  { %v134_v53 = vrot.slane %v133_v52, 4 }
 0x121   :  { %v149_v57 = vadd.f32 %v148_v51, %v147_v50 }
 0x122   :  { %v135_v54 = vadd.f32 %v134_v53, %v133_v52  ;;  %v156_v55 = vpop.xlane.xlu2 %155 }
 0x123   :  { %v157_v56 = vrot.slane %v156_v55, 4  ;;  %v150_v62 = vrot.slane %v149_v57, 1 }
 0x124   :  { %v136_v58 = vrot.slane %v135_v54, 2 }
 0x125   :  { %v158_v59 = vadd.f32 %v157_v56, %v156_v55  ;;  %v151_v2 = vadd.f32 %v150_v62, %v149_v57 }
 0x126   :  { %v137_v60 = vadd.f32 %v136_v58, %v135_v54 }
 0x127   :  { %v159_v61 = vrot.slane %v158_v59, 2 }
 0x128   :  { %v138_v63 = vrot.slane %v137_v60, 1 }
 0x129   :  { %v160_v0 = vadd.f32 %v159_v61, %v158_v59 }
 0x12a   :  { %v139_v1 = vadd.f32 %v138_v63, %v137_v60 }
 0x12b   :  { %v161_v3 = vrot.slane %v160_v0, 1 }
 0x12c   :  { %194 = vpush %v139_v1 }
 0x12d   :  { %196 = vpush %v151_v2  ;;  %v162_v4 = vadd.f32 %v161_v3, %v160_v0 }
 0x12f   :  { %198 = vpush %v162_v4 }
 0x15d   :  { %s195_s3 = spop %194 }
 0x15e   :  { %s141_s4 = smul.f32 0.07361963, %s195_s3  ;;  %s197_s12 = spop %196 }
 0x160   :  { %s142_s13 = sadd.f32 2.0, %s141_s4  ;;  %s199_s14 = spop %198 }
 0x161   :  { %s164_s15 = smul.f32 0.0046012267, %s199_s14 }
 0x162   :  { %v170_v7 = vstv %s142_s13 }
 0x163   :  { %v171_v8 = vsel %vm169_vm5, %v170_v7, 0.0  ;;  %s165_s21 = sadd.f32 %s197_s12, %s164_s15 }
 0x165   :  { %v172_v9 = vstv %s165_s21 }
 0x166   :  { %v173_v10 = vsel %vm168_vm6, %v172_v9, %v171_v8 }
 0x167   :  { %174 = vst [vmem:[#allocation10] sm:$0xff] %v173_v10 }
 0x168   :  { %185 = dma.vmem_to_hbm [thread:$0]  %s181_s17, 128, %s183_s20, [#allocation4]  }
 0x169   :  { %340 = dma.done.wait [#allocation4], 128  }
 0x16a   :  { %341 = vsyncadd [#allocation4], 4294967168 }
 0x16b   :  { %190 = vsyncpa [#allocation3], 1 }
 0x16c   :  { %191 = vsyncpa [#allocation6], 1 }
 0x16d   :  { %192 = vsyncpa [#allocation9], 1 }
 0x16e   :  { %193 = vsyncpa [#allocation4], 1 }

</bundles_post_ra>
